<compile_context>
chip_gen: v7x
topology: tpu7x:2x2x1
jax: 0.10.0
libtpu: 0.0.40
codegen_flags: <defaults>
</compile_context>

<pallas_src>
import functools
import math

import jax
import jax.numpy as jnp
from jax.experimental import pallas as pl
from jax.experimental.pallas import tpu as pltpu

CIN = 17          # conv1 in channels  (fixed by the module)
C1 = 8            # conv1 out channels
KH = KW = 3       # conv1 kernel size
NTAP = KH * KW
NEG_SLOPE = 0.01  # nn.LeakyReLU default negative_slope


def _gate_kernel(x_ref, w1s_ref, b1_ref, w2_ref, b2_ref, masks_ref, o_ref,
                 *, H, W, btile, use_bf16_mxu):
    # x_ref    : (btile, CIN, HW)   input images, spatial flattened on the lane axis
    # w1s_ref  : (NTAP*C1, CIN)     conv1 weight, rows = (dy*3+dx)*C1 + o, cols = c
    # b1_ref   : (C1, 1)            conv1 bias (column)
    # w2_ref   : (C1, 1)            conv2 1x1 weight (column)
    # b2_ref   : (1, 1)             conv2 bias
    # masks_ref: (NTAP*C1, HW)      0/1 f32 boundary masks (output coords), per tap/channel
    # o_ref    : (btile, HW)        scoremap, sublane- and lane-dense
    HW = H * W

    # Hoisted (once per grid step, shared by all images in the block).
    w1s = w1s_ref[...]
    if use_bf16_mxu:
        w1s = w1s.astype(jnp.bfloat16)
    b1_full = jnp.broadcast_to(b1_ref[...], (C1, HW))          # (C1, HW)
    w2col = w2_ref[...]                                        # (C1, 1)
    b2v = b2_ref[...]                                          # (1, 1)

    # Flat lane shift per tap (static); masks handle all wrap-around / padding cases.
    shifts = tuple((-(oy * W + ox)) % HW
                   for oy in (-1, 0, 1) for ox in (-1, 0, 1))
    center = 4  # (oy, ox) == (0, 0): no shift, no mask needed

    def body(bi, carry):
        x = x_ref[bi]                                          # (CIN, HW)
        if use_bf16_mxu:
            x = x.astype(jnp.bfloat16)

        # conv1: all 9 taps' channel contractions in a single MXU push.
        y = jax.lax.dot_general(w1s, x, (((1,), (0,)), ((), ())),
                                preferred_element_type=jnp.float32)   # (NTAP*C1, HW)

        # Sum taps with their lane roll and precomputed boundary-mask multiply.
        acc = b1_full                                          # conv1 bias folded in
        for t in range(NTAP):
            yt = y[t * C1:(t + 1) * C1, :]                     # aligned (C1, HW) slice
            if shifts[t] != 0:
                yt = pltpu.roll(yt, shifts[t], axis=1)
            if t != center:
                yt = yt * masks_ref[t * C1:(t + 1) * C1, :]
            acc = acc + yt

        act = jnp.where(acc > 0, acc, NEG_SLOPE * acc)         # LeakyReLU(0.01)

        # conv2 (1x1): weighted sum of the 8 channel rows on VPU/XLU + bias.
        out_row = jnp.sum(act * w2col, axis=0, keepdims=True) + b2v   # (1, HW)
        o_ref[pl.ds(bi, 1), :] = out_row.astype(o_ref.dtype)
        return carry

    if btile <= 2:
        for bi in range(btile):
            body(bi, 0)
    else:
        jax.lax.fori_loop(0, btile, body, 0, unroll=2)


def _tpu_env():
    """Generation-aware VMEM capacity + whether the chip has 2 TensorCores (v7x)."""
    vmem_cap = 64 << 20           # conservative default (v7x physical VMEM)
    two_tc = False
    try:
        vmem_cap = int(pltpu.get_tpu_info().vmem_capacity_bytes)
    except Exception:
        pass
    try:
        kind = str(jax.devices()[0].device_kind).lower()
        two_tc = ("v7" in kind) or ("7x" in kind)
    except Exception:
        pass
    return vmem_cap, two_tc


def _vmem_bytes_estimate(btile, HW):
    """Per-grid-step VMEM footprint: I/O blocks (double-buffered), masks, y temp."""
    f = 4 * HW
    cin_pad = ((CIN + 7) // 8) * 8                 # 17 -> 24 sublanes
    in_blk = 2 * btile * cin_pad * f               # double-buffered input block
    out_blk = 2 * max(btile, 8) * f                # double-buffered output block
    masks = NTAP * C1 * f                          # resident mask block
    temps = (NTAP * C1 + 4 * C1) * f               # y + acc/act for one in-flight image
    return in_blk + out_blk + masks + temps + (2 << 20)


def _pick_btile(B, HW, budget_bytes, want_two_steps):
    """Largest legal batch tile that fits the VMEM budget.

    Shape rule: the (btile, HW) output block needs btile % 8 == 0 or btile == B.
    >=2 grid steps are only reserved when want_two_steps (v7x megacore)."""
    def ok_shape(bt):
        return bt == B or bt % 8 == 0

    cands = [d for d in range(1, B + 1)
             if B % d == 0 and ok_shape(d)
             and _vmem_bytes_estimate(d, HW) <= budget_bytes]
    if not cands:
        # TODO(synk): spatial row-tiling with a 1-row halo for very large H*W so even
        # btile == min legal fits v7x's 64 MiB VMEM.
        legal = [d for d in range(1, B + 1) if B % d == 0 and ok_shape(d)]
        return min(legal)
    if want_two_steps:
        two = [d for d in cands if B // d >= 2]
        if two:
            return max(two)
    return max(cands)


def gate_module_forward(x_nchw, w1, b1, w2, b2, use_bf16_mxu=False):
    """x_nchw: [B, 17, H, W] f32, weights in PyTorch OIHW layout -> scoremap [B, 1, H, W]."""
    B, C, H, W = x_nchw.shape
    assert C == CIN, f"expected {CIN} input channels, got {C}"
    HW = H * W

    vmem_cap, two_tc = _tpu_env()
    budget = max(32 << 20, min((vmem_cap * 3) // 4, 100 << 20))
    btile = _pick_btile(B, HW, budget, two_tc)

    # Free (metadata-only) reshape: spatial flattened onto the lane axis; NCHW order kept.
    x_flat = x_nchw.reshape(B, CIN, HW)

    # Weights pre-flattened in the wrapper so the kernel does no reshuffling.
    #   w1s rows: (dy*KW + dx)*C1 + o ; cols: input channel c.
    w1s = jnp.transpose(w1, (2, 3, 0, 1)).reshape(NTAP * C1, CIN).astype(jnp.float32)
    b1c = b1.reshape(C1, 1).astype(jnp.float32)
    w2c = w2.reshape(C1, 1).astype(jnp.float32)
    b2c = b2.reshape(1, 1).astype(jnp.float32)

    # Boundary masks in OUTPUT coordinates, built once with integer index math
    # (constant-folded under jit).  Row block t*C1:(t+1)*C1 belongs to tap t.
    lane = jnp.arange(HW, dtype=jnp.int32)
    row = lane // W
    col = lane % W
    mrows = []
    for oy in (-1, 0, 1):
        for ox in (-1, 0, 1):
            valid = ((row + oy >= 0) & (row + oy < H) &
                     (col + ox >= 0) & (col + ox < W)).astype(jnp.float32)
            mrows.append(jnp.broadcast_to(valid[None, :], (C1, HW)))
    masks = jnp.concatenate(mrows, axis=0)                      # (NTAP*C1, HW)

    kernel = functools.partial(_gate_kernel, H=H, W=W, btile=btile,
                               use_bf16_mxu=use_bf16_mxu)

    out_flat = pl.pallas_call(
        kernel,
        out_shape=jax.ShapeDtypeStruct((B, HW), x_nchw.dtype),
        grid_spec=pltpu.PrefetchScalarGridSpec(
            num_scalar_prefetch=0,
            grid=(B // btile,),
            in_specs=[
                pl.BlockSpec((btile, CIN, HW), lambda b: (b, 0, 0)),
                pl.BlockSpec((NTAP * C1, CIN), lambda b: (0, 0)),
                pl.BlockSpec((C1, 1), lambda b: (0, 0)),
                pl.BlockSpec((C1, 1), lambda b: (0, 0)),
                pl.BlockSpec((1, 1), lambda b: (0, 0)),
                pl.BlockSpec((NTAP * C1, HW), lambda b: (0, 0)),
            ],
            out_specs=pl.BlockSpec((btile, HW), lambda b: (b, 0)),
        ),
        compiler_params=pltpu.CompilerParams(
            dimension_semantics=("parallel",),
            vmem_limit_bytes=int(budget)),
    )(x_flat, w1s, b1c, w2c, b2c, masks)

    return out_flat.reshape(B, 1, H, W)


def _reference_forward(x_nchw, w1, b1, w2, b2):
    """Plain-JAX/XLA reference with the same semantics as the PyTorch module."""
    y = jax.lax.conv_general_dilated(
        x_nchw, w1, window_strides=(1, 1), padding=((1, 1), (1, 1)),
        dimension_numbers=("NCHW", "OIHW", "NCHW"))
    y = y + b1.reshape(1, -1, 1, 1)
    y = jnp.where(y > 0, y, NEG_SLOPE * y)
    z = jax.lax.conv_general_dilated(
        y, w2, window_strides=(1, 1), padding=((0, 0), (0, 0)),
        dimension_numbers=("NCHW", "OIHW", "NCHW"))
    return z + b2.reshape(1, -1, 1, 1)


if __name__ == "__main__":
    key = jax.random.PRNGKey(0)
    kx, kw1, kb1, kw2, kb2 = jax.random.split(key, 5)

    B, H, W = 2, 16, 16
    x = jax.random.normal(kx, (B, CIN, H, W), dtype=jnp.float32)

    # Weight init mirrors the module: normal(0, sqrt(2 / (k*k*out_ch))).
    # Biases get small nonzero values so the bias paths are actually exercised.
    std1 = math.sqrt(2.0 / (KH * KW * C1))
    w1 = std1 * jax.random.normal(kw1, (C1, CIN, KH, KW), dtype=jnp.float32)  # OIHW
    b1 = 0.1 * jax.random.normal(kb1, (C1,), dtype=jnp.float32)
    std2 = math.sqrt(2.0 / (1 * 1 * 1))
    w2 = std2 * jax.random.normal(kw2, (1, C1, 1, 1), dtype=jnp.float32)      # OIHW
    b2 = 0.1 * jax.random.normal(kb2, (1,), dtype=jnp.float32)

    scoremap = jax.block_until_ready(jax.jit(gate_module_forward)(x, w1, b1, w2, b2))
    assert scoremap.shape == (B, 1, H, W)

    ref = jax.block_until_ready(_reference_forward(x, w1, b1, w2, b2))
    max_err = float(jnp.max(jnp.abs(scoremap - ref)))
    assert jnp.allclose(scoremap, ref, atol=1e-3, rtol=1e-3), f"max abs err = {max_err}"

    print("KERNEL_OK")
</pallas_src>

<mosaic_0001>
module attributes {stable_mosaic.version = 11 : i64} {
  func.func @_gate_kernel(%arg0: i32, %arg1: memref<2x17x256xf32, #tpu.memory_space<vmem>>, %arg2: memref<72x17xf32, #tpu.memory_space<vmem>>, %arg3: memref<8x1xf32, #tpu.memory_space<vmem>>, %arg4: memref<8x1xf32, #tpu.memory_space<vmem>>, %arg5: memref<1x1xf32, #tpu.memory_space<vmem>>, %arg6: memref<72x256xf32, #tpu.memory_space<vmem>>, %arg7: memref<2x256xf32, #tpu.memory_space<vmem>>) attributes {dimension_semantics = [#tpu.dimension_semantics<parallel>], iteration_bounds = array<i64: 1>, scalar_prefetch = 0 : i64, scratch_operands = 0 : i64, tpu.core_type = #tpu.core_type<tc>, window_params = [{transform_indices = @transform_0, window_bounds = array<i64: 2, 17, 256>}, {pipeline_mode = #tpu.pipeline_mode<synchronous>, transform_indices = @transform_1, window_bounds = array<i64: 72, 17>}, {pipeline_mode = #tpu.pipeline_mode<synchronous>, transform_indices = @transform_2, window_bounds = array<i64: 8, 1>}, {pipeline_mode = #tpu.pipeline_mode<synchronous>, transform_indices = @transform_3, window_bounds = array<i64: 8, 1>}, {pipeline_mode = #tpu.pipeline_mode<synchronous>, transform_indices = @transform_4, window_bounds = array<i64: 1, 1>}, {pipeline_mode = #tpu.pipeline_mode<synchronous>, transform_indices = @transform_5, window_bounds = array<i64: 72, 256>}, {transform_indices = @transform_6, window_bounds = array<i64: 2, 256>}]} {
    %c0 = arith.constant 0 : index
    %c0_0 = arith.constant 0 : index
    %0 = vector.load %arg2[%c0, %c0_0] : memref<72x17xf32, #tpu.memory_space<vmem>>, vector<72x17xf32>
    %c0_1 = arith.constant 0 : index
    %c0_2 = arith.constant 0 : index
    %1 = vector.load %arg3[%c0_1, %c0_2] : memref<8x1xf32, #tpu.memory_space<vmem>>, vector<8x1xf32>
    %2 = vector.shape_cast %1 : vector<8x1xf32> to vector<8x1xf32>
    %3 = vector.broadcast %2 : vector<8x1xf32> to vector<8x256xf32>
    %c0_3 = arith.constant 0 : index
    %c0_4 = arith.constant 0 : index
    %4 = vector.load %arg4[%c0_3, %c0_4] : memref<8x1xf32, #tpu.memory_space<vmem>>, vector<8x1xf32>
    %c0_5 = arith.constant 0 : index
    %c0_6 = arith.constant 0 : index
    %5 = vector.load %arg5[%c0_5, %c0_6] : memref<1x1xf32, #tpu.memory_space<vmem>>, vector<1x1xf32>
    %c0_7 = arith.constant 0 : index
    %c0_8 = arith.constant 0 : index
    %c0_9 = arith.constant 0 : index
    %6 = vector.load %arg1[%c0_7, %c0_8, %c0_9] : memref<2x17x256xf32, #tpu.memory_space<vmem>>, vector<1x17x256xf32>
    %7 = vector.shape_cast %6 : vector<1x17x256xf32> to vector<17x256xf32>
    %cst = arith.constant dense<0.000000e+00> : vector<72x256xf32>
    %8 = tpu.matmul %0, %7, %cst {dimension_numbers = #tpu.dot_dimension_numbers<[1], [0], [0], [1], [0, 0, 1, 1], [], []>} : vector<72x17xf32>, vector<17x256xf32>, vector<72x256xf32> -> vector<72x256xf32>
    %9 = vector.extract_strided_slice %8 {offsets = [0, 0], sizes = [8, 256], strides = [1, 1]} : vector<72x256xf32> to vector<8x256xf32>
    %c17_i32 = arith.constant 17 : i32
    %10 = tpu.dynamic_rotate %9 by %c17_i32 dim 1 : vector<8x256xf32>, i32 -> vector<8x256xf32>
    %c0_10 = arith.constant 0 : index
    %c0_11 = arith.constant 0 : index
    %11 = vector.load %arg6[%c0_10, %c0_11] : memref<72x256xf32, #tpu.memory_space<vmem>>, vector<8x256xf32>
    %12 = arith.mulf %10, %11 : vector<8x256xf32>
    %13 = arith.addf %3, %12 : vector<8x256xf32>
    %14 = vector.extract_strided_slice %8 {offsets = [8, 0], sizes = [8, 256], strides = [1, 1]} : vector<72x256xf32> to vector<8x256xf32>
    %c16_i32 = arith.constant 16 : i32
    %15 = tpu.dynamic_rotate %14 by %c16_i32 dim 1 : vector<8x256xf32>, i32 -> vector<8x256xf32>
    %c8 = arith.constant 8 : index
    %c0_12 = arith.constant 0 : index
    %16 = vector.load %arg6[%c8, %c0_12] : memref<72x256xf32, #tpu.memory_space<vmem>>, vector<8x256xf32>
    %17 = arith.mulf %15, %16 : vector<8x256xf32>
    %18 = arith.addf %13, %17 : vector<8x256xf32>
    %19 = vector.extract_strided_slice %8 {offsets = [16, 0], sizes = [8, 256], strides = [1, 1]} : vector<72x256xf32> to vector<8x256xf32>
    %c15_i32 = arith.constant 15 : i32
    %20 = tpu.dynamic_rotate %19 by %c15_i32 dim 1 : vector<8x256xf32>, i32 -> vector<8x256xf32>
    %c16 = arith.constant 16 : index
    %c0_13 = arith.constant 0 : index
    %21 = vector.load %arg6[%c16, %c0_13] : memref<72x256xf32, #tpu.memory_space<vmem>>, vector<8x256xf32>
    %22 = arith.mulf %20, %21 : vector<8x256xf32>
    %23 = arith.addf %18, %22 : vector<8x256xf32>
    %24 = vector.extract_strided_slice %8 {offsets = [24, 0], sizes = [8, 256], strides = [1, 1]} : vector<72x256xf32> to vector<8x256xf32>
    %c1_i32 = arith.constant 1 : i32
    %25 = tpu.dynamic_rotate %24 by %c1_i32 dim 1 : vector<8x256xf32>, i32 -> vector<8x256xf32>
    %c24 = arith.constant 24 : index
    %c0_14 = arith.constant 0 : index
    %26 = vector.load %arg6[%c24, %c0_14] : memref<72x256xf32, #tpu.memory_space<vmem>>, vector<8x256xf32>
    %27 = arith.mulf %25, %26 : vector<8x256xf32>
    %28 = arith.addf %23, %27 : vector<8x256xf32>
    %29 = vector.extract_strided_slice %8 {offsets = [32, 0], sizes = [8, 256], strides = [1, 1]} : vector<72x256xf32> to vector<8x256xf32>
    %30 = arith.addf %28, %29 : vector<8x256xf32>
    %31 = vector.extract_strided_slice %8 {offsets = [40, 0], sizes = [8, 256], strides = [1, 1]} : vector<72x256xf32> to vector<8x256xf32>
    %c255_i32 = arith.constant 255 : i32
    %32 = tpu.dynamic_rotate %31 by %c255_i32 dim 1 : vector<8x256xf32>, i32 -> vector<8x256xf32>
    %c40 = arith.constant 40 : index
    %c0_15 = arith.constant 0 : index
    %33 = vector.load %arg6[%c40, %c0_15] : memref<72x256xf32, #tpu.memory_space<vmem>>, vector<8x256xf32>
    %34 = arith.mulf %32, %33 : vector<8x256xf32>
    %35 = arith.addf %30, %34 : vector<8x256xf32>
    %36 = vector.extract_strided_slice %8 {offsets = [48, 0], sizes = [8, 256], strides = [1, 1]} : vector<72x256xf32> to vector<8x256xf32>
    %c241_i32 = arith.constant 241 : i32
    %37 = tpu.dynamic_rotate %36 by %c241_i32 dim 1 : vector<8x256xf32>, i32 -> vector<8x256xf32>
    %c48 = arith.constant 48 : index
    %c0_16 = arith.constant 0 : index
    %38 = vector.load %arg6[%c48, %c0_16] : memref<72x256xf32, #tpu.memory_space<vmem>>, vector<8x256xf32>
    %39 = arith.mulf %37, %38 : vector<8x256xf32>
    %40 = arith.addf %35, %39 : vector<8x256xf32>
    %41 = vector.extract_strided_slice %8 {offsets = [56, 0], sizes = [8, 256], strides = [1, 1]} : vector<72x256xf32> to vector<8x256xf32>
    %c240_i32 = arith.constant 240 : i32
    %42 = tpu.dynamic_rotate %41 by %c240_i32 dim 1 : vector<8x256xf32>, i32 -> vector<8x256xf32>
    %c56 = arith.constant 56 : index
    %c0_17 = arith.constant 0 : index
    %43 = vector.load %arg6[%c56, %c0_17] : memref<72x256xf32, #tpu.memory_space<vmem>>, vector<8x256xf32>
    %44 = arith.mulf %42, %43 : vector<8x256xf32>
    %45 = arith.addf %40, %44 : vector<8x256xf32>
    %46 = vector.extract_strided_slice %8 {offsets = [64, 0], sizes = [8, 256], strides = [1, 1]} : vector<72x256xf32> to vector<8x256xf32>
    %c239_i32 = arith.constant 239 : i32
    %47 = tpu.dynamic_rotate %46 by %c239_i32 dim 1 : vector<8x256xf32>, i32 -> vector<8x256xf32>
    %c64 = arith.constant 64 : index
    %c0_18 = arith.constant 0 : index
    %48 = vector.load %arg6[%c64, %c0_18] : memref<72x256xf32, #tpu.memory_space<vmem>>, vector<8x256xf32>
    %49 = arith.mulf %47, %48 : vector<8x256xf32>
    %50 = arith.addf %45, %49 : vector<8x256xf32>
    %cst_19 = arith.constant 0.000000e+00 : f32
    %51 = vector.broadcast %cst_19 : f32 to vector<8x256xf32>
    %52 = arith.cmpf ogt, %50, %51 : vector<8x256xf32>
    %cst_20 = arith.constant 0.00999999977 : f32
    %53 = vector.broadcast %cst_20 : f32 to vector<8x256xf32>
    %54 = arith.mulf %53, %50 : vector<8x256xf32>
    %55 = arith.select %52, %50, %54 : vector<8x256xi1>, vector<8x256xf32>
    %56 = vector.broadcast %4 : vector<8x1xf32> to vector<8x256xf32>
    %57 = arith.mulf %55, %56 : vector<8x256xf32>
    %cst_21 = arith.constant dense<0.000000e+00> : vector<256xf32>
    %58 = vector.multi_reduction <add>, %57, %cst_21 [0] : vector<8x256xf32> to vector<256xf32>
    %59 = vector.shape_cast %58 : vector<256xf32> to vector<1x256xf32>
    %60 = vector.broadcast %5 : vector<1x1xf32> to vector<1x256xf32>
    %61 = arith.addf %59, %60 : vector<1x256xf32>
    %c0_22 = arith.constant 0 : index
    %c0_23 = arith.constant 0 : index
    %62 = vector.load %arg7[%c0_22, %c0_23] : memref<2x256xf32, #tpu.memory_space<vmem>>, vector<1x256xf32>
    tpu.vector_store %arg7[%c0_22, %c0_23], %61 {strides = array<i32>} : memref<2x256xf32, #tpu.memory_space<vmem>>, vector<1x256xf32>,
    %c1 = arith.constant 1 : index
    %c0_24 = arith.constant 0 : index
    %c0_25 = arith.constant 0 : index
    %63 = vector.load %arg1[%c1, %c0_24, %c0_25] : memref<2x17x256xf32, #tpu.memory_space<vmem>>, vector<1x17x256xf32>
    %64 = vector.shape_cast %63 : vector<1x17x256xf32> to vector<17x256xf32>
    %cst_26 = arith.constant dense<0.000000e+00> : vector<72x256xf32>
    %65 = tpu.matmul %0, %64, %cst_26 {dimension_numbers = #tpu.dot_dimension_numbers<[1], [0], [0], [1], [0, 0, 1, 1], [], []>} : vector<72x17xf32>, vector<17x256xf32>, vector<72x256xf32> -> vector<72x256xf32>
    %66 = vector.extract_strided_slice %65 {offsets = [0, 0], sizes = [8, 256], strides = [1, 1]} : vector<72x256xf32> to vector<8x256xf32>
    %c17_i32_27 = arith.constant 17 : i32
    %67 = tpu.dynamic_rotate %66 by %c17_i32_27 dim 1 : vector<8x256xf32>, i32 -> vector<8x256xf32>
    %c0_28 = arith.constant 0 : index
    %c0_29 = arith.constant 0 : index
    %68 = vector.load %arg6[%c0_28, %c0_29] : memref<72x256xf32, #tpu.memory_space<vmem>>, vector<8x256xf32>
    %69 = arith.mulf %67, %68 : vector<8x256xf32>
    %70 = arith.addf %3, %69 : vector<8x256xf32>
    %71 = vector.extract_strided_slice %65 {offsets = [8, 0], sizes = [8, 256], strides = [1, 1]} : vector<72x256xf32> to vector<8x256xf32>
    %c16_i32_30 = arith.constant 16 : i32
    %72 = tpu.dynamic_rotate %71 by %c16_i32_30 dim 1 : vector<8x256xf32>, i32 -> vector<8x256xf32>
    %c8_31 = arith.constant 8 : index
    %c0_32 = arith.constant 0 : index
    %73 = vector.load %arg6[%c8_31, %c0_32] : memref<72x256xf32, #tpu.memory_space<vmem>>, vector<8x256xf32>
    %74 = arith.mulf %72, %73 : vector<8x256xf32>
    %75 = arith.addf %70, %74 : vector<8x256xf32>
    %76 = vector.extract_strided_slice %65 {offsets = [16, 0], sizes = [8, 256], strides = [1, 1]} : vector<72x256xf32> to vector<8x256xf32>
    %c15_i32_33 = arith.constant 15 : i32
    %77 = tpu.dynamic_rotate %76 by %c15_i32_33 dim 1 : vector<8x256xf32>, i32 -> vector<8x256xf32>
    %c16_34 = arith.constant 16 : index
    %c0_35 = arith.constant 0 : index
    %78 = vector.load %arg6[%c16_34, %c0_35] : memref<72x256xf32, #tpu.memory_space<vmem>>, vector<8x256xf32>
    %79 = arith.mulf %77, %78 : vector<8x256xf32>
    %80 = arith.addf %75, %79 : vector<8x256xf32>
    %81 = vector.extract_strided_slice %65 {offsets = [24, 0], sizes = [8, 256], strides = [1, 1]} : vector<72x256xf32> to vector<8x256xf32>
    %c1_i32_36 = arith.constant 1 : i32
    %82 = tpu.dynamic_rotate %81 by %c1_i32_36 dim 1 : vector<8x256xf32>, i32 -> vector<8x256xf32>
    %c24_37 = arith.constant 24 : index
    %c0_38 = arith.constant 0 : index
    %83 = vector.load %arg6[%c24_37, %c0_38] : memref<72x256xf32, #tpu.memory_space<vmem>>, vector<8x256xf32>
    %84 = arith.mulf %82, %83 : vector<8x256xf32>
    %85 = arith.addf %80, %84 : vector<8x256xf32>
    %86 = vector.extract_strided_slice %65 {offsets = [32, 0], sizes = [8, 256], strides = [1, 1]} : vector<72x256xf32> to vector<8x256xf32>
    %87 = arith.addf %85, %86 : vector<8x256xf32>
    %88 = vector.extract_strided_slice %65 {offsets = [40, 0], sizes = [8, 256], strides = [1, 1]} : vector<72x256xf32> to vector<8x256xf32>
    %c255_i32_39 = arith.constant 255 : i32
    %89 = tpu.dynamic_rotate %88 by %c255_i32_39 dim 1 : vector<8x256xf32>, i32 -> vector<8x256xf32>
    %c40_40 = arith.constant 40 : index
    %c0_41 = arith.constant 0 : index
    %90 = vector.load %arg6[%c40_40, %c0_41] : memref<72x256xf32, #tpu.memory_space<vmem>>, vector<8x256xf32>
    %91 = arith.mulf %89, %90 : vector<8x256xf32>
    %92 = arith.addf %87, %91 : vector<8x256xf32>
    %93 = vector.extract_strided_slice %65 {offsets = [48, 0], sizes = [8, 256], strides = [1, 1]} : vector<72x256xf32> to vector<8x256xf32>
    %c241_i32_42 = arith.constant 241 : i32
    %94 = tpu.dynamic_rotate %93 by %c241_i32_42 dim 1 : vector<8x256xf32>, i32 -> vector<8x256xf32>
    %c48_43 = arith.constant 48 : index
    %c0_44 = arith.constant 0 : index
    %95 = vector.load %arg6[%c48_43, %c0_44] : memref<72x256xf32, #tpu.memory_space<vmem>>, vector<8x256xf32>
    %96 = arith.mulf %94, %95 : vector<8x256xf32>
    %97 = arith.addf %92, %96 : vector<8x256xf32>
    %98 = vector.extract_strided_slice %65 {offsets = [56, 0], sizes = [8, 256], strides = [1, 1]} : vector<72x256xf32> to vector<8x256xf32>
    %c240_i32_45 = arith.constant 240 : i32
    %99 = tpu.dynamic_rotate %98 by %c240_i32_45 dim 1 : vector<8x256xf32>, i32 -> vector<8x256xf32>
    %c56_46 = arith.constant 56 : index
    %c0_47 = arith.constant 0 : index
    %100 = vector.load %arg6[%c56_46, %c0_47] : memref<72x256xf32, #tpu.memory_space<vmem>>, vector<8x256xf32>
    %101 = arith.mulf %99, %100 : vector<8x256xf32>
    %102 = arith.addf %97, %101 : vector<8x256xf32>
    %103 = vector.extract_strided_slice %65 {offsets = [64, 0], sizes = [8, 256], strides = [1, 1]} : vector<72x256xf32> to vector<8x256xf32>
    %c239_i32_48 = arith.constant 239 : i32
    %104 = tpu.dynamic_rotate %103 by %c239_i32_48 dim 1 : vector<8x256xf32>, i32 -> vector<8x256xf32>
    %c64_49 = arith.constant 64 : index
    %c0_50 = arith.constant 0 : index
    %105 = vector.load %arg6[%c64_49, %c0_50] : memref<72x256xf32, #tpu.memory_space<vmem>>, vector<8x256xf32>
    %106 = arith.mulf %104, %105 : vector<8x256xf32>
    %107 = arith.addf %102, %106 : vector<8x256xf32>
    %cst_51 = arith.constant 0.000000e+00 : f32
    %108 = vector.broadcast %cst_51 : f32 to vector<8x256xf32>
    %109 = arith.cmpf ogt, %107, %108 : vector<8x256xf32>
    %cst_52 = arith.constant 0.00999999977 : f32
    %110 = vector.broadcast %cst_52 : f32 to vector<8x256xf32>
    %111 = arith.mulf %110, %107 : vector<8x256xf32>
    %112 = arith.select %109, %107, %111 : vector<8x256xi1>, vector<8x256xf32>
    %113 = vector.broadcast %4 : vector<8x1xf32> to vector<8x256xf32>
    %114 = arith.mulf %112, %113 : vector<8x256xf32>
    %cst_53 = arith.constant dense<0.000000e+00> : vector<256xf32>
    %115 = vector.multi_reduction <add>, %114, %cst_53 [0] : vector<8x256xf32> to vector<256xf32>
    %116 = vector.shape_cast %115 : vector<256xf32> to vector<1x256xf32>
    %117 = vector.broadcast %5 : vector<1x1xf32> to vector<1x256xf32>
    %118 = arith.addf %116, %117 : vector<1x256xf32>
    %c1_54 = arith.constant 1 : index
    %c0_55 = arith.constant 0 : index
    %119 = vector.load %arg7[%c1_54, %c0_55] : memref<2x256xf32, #tpu.memory_space<vmem>>, vector<1x256xf32>
    tpu.vector_store %arg7[%c1_54, %c0_55], %118 {strides = array<i32>} : memref<2x256xf32, #tpu.memory_space<vmem>>, vector<1x256xf32>,
    return
  }
  func.func @transform_0(%arg0: i32) -> (i32, i32, i32) {
    %c0_i32 = arith.constant 0 : i32
    %c0_i32_0 = arith.constant 0 : i32
    %c0_i32_1 = arith.constant 0 : i32
    return %arg0, %c0_i32, %c0_i32_0 : i32, i32, i32
  }
  func.func @transform_1(%arg0: i32) -> (i32, i32) {
    %c0_i32 = arith.constant 0 : i32
    %c0_i32_0 = arith.constant 0 : i32
    %c0_i32_1 = arith.constant 0 : i32
    return %c0_i32, %c0_i32_0 : i32, i32
  }
  func.func @transform_2(%arg0: i32) -> (i32, i32) {
    %c0_i32 = arith.constant 0 : i32
    %c0_i32_0 = arith.constant 0 : i32
    %c0_i32_1 = arith.constant 0 : i32
    return %c0_i32, %c0_i32_0 : i32, i32
  }
  func.func @transform_3(%arg0: i32) -> (i32, i32) {
    %c0_i32 = arith.constant 0 : i32
    %c0_i32_0 = arith.constant 0 : i32
    %c0_i32_1 = arith.constant 0 : i32
    return %c0_i32, %c0_i32_0 : i32, i32
  }
  func.func @transform_4(%arg0: i32) -> (i32, i32) {
    %c0_i32 = arith.constant 0 : i32
    %c0_i32_0 = arith.constant 0 : i32
    %c0_i32_1 = arith.constant 0 : i32
    return %c0_i32, %c0_i32_0 : i32, i32
  }
  func.func @transform_5(%arg0: i32) -> (i32, i32) {
    %c0_i32 = arith.constant 0 : i32
    %c0_i32_0 = arith.constant 0 : i32
    %c0_i32_1 = arith.constant 0 : i32
    return %c0_i32, %c0_i32_0 : i32, i32
  }
  func.func @transform_6(%arg0: i32) -> (i32, i32) {
    %c0_i32 = arith.constant 0 : i32
    %c0_i32_0 = arith.constant 0 : i32
    return %arg0, %c0_i32 : i32, i32
  }
}

</mosaic_0001>

<bundles_post_ra>
// kernel: gate_module_forward.1
= control target key start
LH: loop header
LB: loop body
LE: loop exit
PB: predicated region body
PF: predicated region fallthrough
CT: control target
= control target key end

     0   :  { %v695_v3 = vmov 0.0   ;;  %v696_v8 = vmov 0   ;;  %vm76_vm0 = vcmask 1040384   ;;  %vm48_vm1 = vcmask 138240   ;;  %s697_s17 = smov 17   ;;  %s700_s18 = smov 1   ;;  %s1022_s0 = inlined_call_operand.vmem [shape: f32[2,17,256], index: 0, kind: input, shape index: {}]   ;;  %s1023_s1 = inlined_call_operand.vmem [shape: f32[72,17], index: 1, kind: input, shape index: {}]   ;;  %s1024_s2 = inlined_call_operand.vmem [shape: f32[8,1], index: 2, kind: input, shape index: {}]   ;;  %s1025_s4 = inlined_call_operand.<no memory space> [shape: f32[1,1], index: 4, kind: input, shape index: {}]   ;;  %s1026_s3 = inlined_call_operand.vmem [shape: f32[8,1], index: 3, kind: input, shape index: {}]   ;;  %s1027_s5 = inlined_call_operand.vmem [shape: f32[72,256], index: 5, kind: input, shape index: {}]   ;;  %s1028_s6 = inlined_call_operand.vmem [shape: f32[2,256], index: 6, kind: output, shape index: {}]  }
   0x1   :  { %v43_v0 = vld [vmem:[%s1022_s0 + $0x8] sm:$0xff]  ;;  %v45_v1 = vld [vmem:[%s1022_s0 + $0x18] sm:$0xff]  ;;  %147 = vmatprep.mubr.f32.mxu0 %v695_v3  ;;  %446 = vmatprep.mubr.f32.mxu1 %v695_v3  ;;  %v42_v6 = vld [vmem:[%s1022_s0] sm:$0xff]  ;;  %v11_v28 = vstv %s1025_s4  ;;  %s699_s4 = smov 15   ;;  %s701_s19 = smov 127  }
   0x2   :  { %v657_v2 = vld [vmem:[%s1022_s0 + $0x38] sm:$0xff]  ;;  %v674_v4 = vpack.c.bf16 %v45_v1, %v43_v0  ;;  %v659_v5 = vld [vmem:[%s1022_s0 + $0x48] sm:$0xff]  ;;  %v44_v7 = vld [vmem:[%s1022_s0 + $0x10] sm:$0xff]  ;;  %693 = vset.pattern.permute.xlu0 %v696_v8  ;;  %694 = vset.pattern.permute.xlu1 %v696_v8  ;;  %12 = vst [vmem:[#allocation2] sm:$0x1] %v11_v28  ;;  %s702_s20 = smov 113  }
   0x3   :  { %v678_v9 = vpack.c.bf16 %v659_v5, %v657_v2  ;;  %v676_v10 = vpack.c.bf16 %v44_v7, %v42_v6  ;;  %v656_v11 = vld [vmem:[%s1022_s0 + $0x30] sm:$0xff]  ;;  %v658_v12 = vld [vmem:[%s1022_s0 + $0x40] sm:$0xff]  ;;  %v47_v13 = vld [vmem:[%s1022_s0 + $0x28] sm:$0x1]  ;;  %s703_s21 = smov 112   ;;  %s704_s22 = smov 111  }
   0x4   :  { %675 = vmatprep.subr.bf16.mxu0 %v674_v4  ;;  %v680_v14 = vpack.c.bf16 %v658_v12, %v656_v11  ;;  %v661_v15 = vld [vmem:[%s1022_s0 + $0x58] sm:$0x1]  ;;  %v46_v16 = vld [vmem:[%s1022_s0 + $0x20] sm:$0x1]  ;;  %v660_v17 = vld [vmem:[%s1022_s0 + $0x50] sm:$0x1] }
   0x5   :  { %679 = vmatprep.subr.bf16.mxu1 %v678_v9  ;;  %677 = vmatpush1.bf16.msra.mxu0 %v676_v10  ;;  %v25_v18 = vld [vmem:[%s1023_s1] sm:$0xff]  ;;  %v26_v20 = vld [vmem:[%s1023_s1 + $0x8] sm:$0xff]  ;;  %v27_v21 = vld [vmem:[%s1023_s1 + $0x10] sm:$0xff] }
   0x6   :  { %681 = vmatpush1.bf16.msra.mxu1 %v680_v14  ;;  %645 = vmatprep.subr.msk.mxu0 %vm76_vm0, %v47_v13  ;;  %v34_v19 = vld [vmem:[%s1024_s2] sm:$0xff]  ;;  %v28_v22 = vld [vmem:[%s1023_s1 + $0x18] sm:$0xff]  ;;  %v30_v24 = vld [vmem:[%s1023_s1 + $0x28] sm:$0xff] }
   0x7   :  { %662 = vmatprep.subr.msk.mxu1 %vm76_vm0, %v661_v15  ;;  %37 = vperm.xlu0 %693, %v34_v19   ;;  %v29_v23 = vld [vmem:[%s1023_s1 + $0x20] sm:$0xff]  ;;  %v31_v25 = vld [vmem:[%s1023_s1 + $0x30] sm:$0xff]  ;;  %v32_v26 = vld [vmem:[%s1023_s1 + $0x38] sm:$0xff] }
   0x8   :  { %v33_v27 = vld [vmem:[%s1023_s1 + $0x40] sm:$0xff]  ;;  %s698_s1 = smov 16  }
   0x9   :  { %646 = vmatpush1.msk.msra.mxu0 %vm76_vm0, %v46_v16  ;;  %v41_v1 = vld [vmem:[#allocation2] sm:$0x1] }
   0xa   :  { %663 = vmatpush1.msk.msra.mxu1 %vm76_vm0, %v660_v17  ;;  %647 = vmatmul.mubr.msk.f32.vlgmr.msra.gmra.mrb[0].mxu0 %vm48_vm1, %v25_v18  ;;  %v40_v2 = vld [vmem:[%s1026_s3] sm:$0xff] }
   0xb   :  { %664 = vmatmul.mubr.msk.f32.vlgmr.msra.gmra.mrb[0].mxu1 %vm48_vm1, %v25_v18  ;;  %153 = vmatprep.mubr.f32.mxu0 %v695_v3  ;;  %v206_v18 = vlaneseq }
   0xc   :  { %452 = vmatprep.mubr.f32.mxu1 %v695_v3 }
   0xd   :  { %vm366_vm14 = vcmp.lt.s32.totalorder %v206_v18, 256 }
   0xe   :  { %648 = vmatmul.mubr.msk.f32.gmra.mrb[2].mxu0 %vm48_vm1, %v26_v20 }
   0xf   :  { %665 = vmatmul.mubr.msk.f32.gmra.mrb[2].mxu1 %vm48_vm1, %v26_v20  ;;  %159 = vmatprep.mubr.f32.mxu0 %v695_v3 }
  0x10   :  { %458 = vmatprep.mubr.f32.mxu1 %v695_v3 }
  0x12   :  { %649 = vmatmul.mubr.msk.f32.gmra.mrb[4].mxu0 %vm48_vm1, %v27_v21 }
  0x13   :  { %666 = vmatmul.mubr.msk.f32.gmra.mrb[4].mxu1 %vm48_vm1, %v27_v21  ;;  %165 = vmatprep.mubr.f32.mxu0 %v695_v3  ;;  %v864_v21 = vand.u32 127, %v206_v18 }
  0x14   :  { %464 = vmatprep.mubr.f32.mxu1 %v695_v3 }
  0x15   :  { %vm208_vm2 = vcmp.lt.s32.totalorder %v864_v21, 17  ;;  %vm221_vm3 = vcmp.lt.s32.totalorder %v864_v21, 16  ;;  %vm234_vm4 = vcmp.lt.s32.totalorder %v864_v21, 15  ;;  %vm247_vm5 = vcmp.lt.s32.totalorder %v864_v21, 1 }
  0x16   :  { %650 = vmatmul.mubr.msk.f32.gmra.mrb[6].mxu0 %vm48_vm1, %v28_v22  ;;  %vm262_vm6 = vcmp.lt.s32.totalorder %v864_v21, 127  ;;  %vm275_vm7 = vcmp.lt.s32.totalorder %v864_v21, 113  ;;  %vm288_vm8 = vcmp.lt.s32.totalorder %v864_v21, 112  ;;  %vm301_vm9 = vcmp.lt.s32.totalorder %v864_v21, 111 }
  0x17   :  { %171 = vmatprep.mubr.f32.mxu0 %v695_v3  ;;  %667 = vmatmul.mubr.msk.f32.gmra.mrb[6].mxu1 %vm48_vm1, %v28_v22 }
  0x18   :  { %470 = vmatprep.mubr.f32.mxu1 %v695_v3 }
  0x1a   :  { %651 = vmatmul.mubr.msk.f32.gmra.mrb[8].mxu0 %vm48_vm1, %v29_v23 }
  0x1b   :  { %177 = vmatprep.mubr.f32.mxu0 %v695_v3  ;;  %668 = vmatmul.mubr.msk.f32.gmra.mrb[8].mxu1 %vm48_vm1, %v29_v23 }
  0x1c   :  { %476 = vmatprep.mubr.f32.mxu1 %v695_v3 }
  0x1e   :  { %652 = vmatmul.mubr.msk.f32.gmra.mrb[10].mxu0 %vm48_vm1, %v30_v24 }
  0x1f   :  { %669 = vmatmul.mubr.msk.f32.gmra.mrb[10].mxu1 %vm48_vm1, %v30_v24  ;;  %183 = vmatprep.mubr.f32.mxu0 %v695_v3 }
  0x20   :  { %482 = vmatprep.mubr.f32.mxu1 %v695_v3 }
  0x22   :  { %653 = vmatmul.mubr.msk.f32.gmra.mrb[12].mxu0 %vm48_vm1, %v31_v25 }
  0x23   :  { %670 = vmatmul.mubr.msk.f32.gmra.mrb[12].mxu1 %vm48_vm1, %v31_v25  ;;  %189 = vmatprep.mubr.f32.mxu0 %v695_v3  ;;  %v507_v25 = vld [vmem:[%s1027_s5] sm:$0xff] }
  0x24   :  { %488 = vmatprep.mubr.f32.mxu1 %v695_v3 }
  0x26   :  { %654 = vmatmul.mubr.msk.f32.gmra.mrb[14].mxu0 %vm48_vm1, %v32_v26 }
  0x27   :  { %671 = vmatmul.mubr.msk.f32.gmra.mrb[14].mxu1 %vm48_vm1, %v32_v26  ;;  %195 = vmatprep.mubr.f32.mxu0 %v695_v3 }
  0x28   :  { %494 = vmatprep.mubr.f32.mxu1 %v695_v3 }
  0x2a   :  { %655 = vmatmul.mubr.msk.f32.gmra.mrb[16].mxu0 %vm48_vm1, %v33_v27 }
  0x2b   :  { %672 = vmatmul.mubr.msk.f32.gmra.mrb[16].mxu1 %vm48_vm1, %v33_v27 }
  0x86   :  { %v861_v3 = vpop.permute.xlu0 %37 }
  0xdd   :  { %v149_v29 = vpop.f32.mrb[0].mxu0 }
  0xde   :  { %v448_v30 = vpop.f32.mrb[0].mxu1  ;;  %202 = vrot.lane.b32.xlu0 %v149_v29, %s697_s17  ;;  %v151_v31 = vpop.f32.mrb[1].mxu0  ;;  %v508_v29 = vld [vmem:[%s1027_s5 + $0x8] sm:$0xff] }
  0xdf   :  { %501 = vrot.lane.b32.xlu1 %v448_v30, %s697_s17  ;;  %v450_v32 = vpop.f32.mrb[1].mxu1 }
  0xe1   :  { %v155_v33 = vpop.f32.mrb[2].mxu0 }
  0xe2   :  { %503 = vrot.lane.b32.xlu0 %v450_v32, %s697_s17  ;;  %v157_v34 = vpop.f32.mrb[3].mxu0  ;;  %v454_v35 = vpop.f32.mrb[2].mxu1 }
  0xe3   :  { %204 = vrot.lane.b32.xlu1 %v151_v31, %s697_s17  ;;  %v456_v36 = vpop.f32.mrb[3].mxu1 }
  0xe5   :  { %v161_v37 = vpop.f32.mrb[4].mxu0 }
  0xe6   :  { %219 = vrot.lane.b32.xlu0 %v157_v34, %s698_s1  ;;  %v163_v38 = vpop.f32.mrb[5].mxu0  ;;  %v460_v39 = vpop.f32.mrb[4].mxu1 }
  0xe7   :  { %217 = vrot.lane.b32.xlu1 %v155_v33, %s698_s1  ;;  %v462_v40 = vpop.f32.mrb[5].mxu1 }
  0xe9   :  { %v167_v41 = vpop.f32.mrb[6].mxu0 }
  0xea   :  { %515 = vrot.lane.b32.xlu0 %v456_v36, %s698_s1  ;;  %v169_v42 = vpop.f32.mrb[7].mxu0  ;;  %v466_v43 = vpop.f32.mrb[6].mxu1  ;;  %v224_v36 = vld [vmem:[%s1027_s5 + $0x10] sm:$0xff] }
  0xeb   :  { %513 = vrot.lane.b32.xlu1 %v454_v35, %s698_s1  ;;  %v468_v44 = vpop.f32.mrb[7].mxu1 }
  0xed   :  { %v850_v45 = vpop.f32.mrb[8].mxu0 }
  0xee   :  { %232 = vrot.lane.b32.xlu0 %v163_v38, %s699_s4  ;;  %v852_v46 = vpop.f32.mrb[9].mxu0  ;;  %v854_v47 = vpop.f32.mrb[8].mxu1 }
  0xef   :  { %230 = vrot.lane.b32.xlu1 %v161_v37, %s699_s4  ;;  %v856_v48 = vpop.f32.mrb[9].mxu1 }
  0xf1   :  { %v179_v49 = vpop.f32.mrb[10].mxu0 }
  0xf2   :  { %527 = vrot.lane.b32.xlu0 %v462_v40, %s699_s4  ;;  %v181_v50 = vpop.f32.mrb[11].mxu0  ;;  %v478_v51 = vpop.f32.mrb[10].mxu1 }
  0xf3   :  { %525 = vrot.lane.b32.xlu1 %v460_v39, %s699_s4  ;;  %v480_v52 = vpop.f32.mrb[11].mxu1  ;;  %v225_v39 = vld [vmem:[%s1027_s5 + $0x18] sm:$0xff] }
  0xf5   :  { %v185_v53 = vpop.f32.mrb[12].mxu0 }
  0xf6   :  { %245 = vrot.lane.b32.xlu0 %v169_v42, %s700_s18  ;;  %v187_v54 = vpop.f32.mrb[13].mxu0  ;;  %v484_v55 = vpop.f32.mrb[12].mxu1 }
  0xf7   :  { %243 = vrot.lane.b32.xlu1 %v167_v41, %s700_s18  ;;  %v486_v56 = vpop.f32.mrb[13].mxu1 }
  0xf9   :  { %v191_v57 = vpop.f32.mrb[14].mxu0 }
  0xfa   :  { %539 = vrot.lane.b32.xlu0 %v468_v44, %s700_s18  ;;  %v193_v58 = vpop.f32.mrb[15].mxu0  ;;  %v490_v59 = vpop.f32.mrb[14].mxu1 }
  0xfb   :  { %537 = vrot.lane.b32.xlu1 %v466_v43, %s700_s18  ;;  %v492_v60 = vpop.f32.mrb[15].mxu1 }
  0xfd   :  { %v197_v61 = vpop.f32.mrb[16].mxu0 }
  0xfe   :  { %260 = vrot.lane.b32.xlu0 %v181_v50, %s701_s19  ;;  %v199_v62 = vpop.f32.mrb[17].mxu0  ;;  %v496_v63 = vpop.f32.mrb[16].mxu1 }
  0xff   :  { %258 = vrot.lane.b32.xlu1 %v179_v49, %s701_s19  ;;  %v498_v0 = vpop.f32.mrb[17].mxu1  ;;  %v237_v49 = vld [vmem:[%s1027_s5 + $0x20] sm:$0xff] }
 0x102   :  { %553 = vrot.lane.b32.xlu0 %v480_v52, %s701_s19 }
 0x103   :  { %551 = vrot.lane.b32.xlu1 %v478_v51, %s701_s19 }
 0x106   :  { %273 = vrot.lane.b32.xlu0 %v187_v54, %s702_s20  ;;  %v238_v54 = vld [vmem:[%s1027_s5 + $0x28] sm:$0xff] }
 0x107   :  { %271 = vrot.lane.b32.xlu1 %v185_v53, %s702_s20 }
 0x10a   :  { %565 = vrot.lane.b32.xlu0 %v486_v56, %s702_s20 }
 0x10b   :  { %563 = vrot.lane.b32.xlu1 %v484_v55, %s702_s20 }
 0x10e   :  { %286 = vrot.lane.b32.xlu0 %v193_v58, %s703_s21 }
 0x10f   :  { %284 = vrot.lane.b32.xlu1 %v191_v57, %s703_s21 }
 0x112   :  { %577 = vrot.lane.b32.xlu0 %v492_v60, %s703_s21 }
 0x113   :  { %575 = vrot.lane.b32.xlu1 %v490_v59, %s703_s21 }
 0x116   :  { %299 = vrot.lane.b32.xlu0 %v199_v62, %s704_s22 }
 0x117   :  { %297 = vrot.lane.b32.xlu1 %v197_v61, %s704_s22  ;;  %v250_v61 = vld [vmem:[%s1027_s5 + $0x30] sm:$0xff] }
 0x11a   :  { %589 = vrot.lane.b32.xlu0 %v498_v0, %s704_s22 }
 0x11b   :  { %587 = vrot.lane.b32.xlu1 %v496_v63, %s704_s22 }
 0x11e   :  { %337 = vperm.xlu0 %693, %v41_v1   ;;  %v251_v1 = vld [vmem:[%s1027_s5 + $0x38] sm:$0xff] }
 0x11f   :  { %318 = vperm.xlu1 %694, %v40_v2  }
 0x150   :  { %v203_v4 = vpop.permute.xlu0 %202 }
 0x151   :  { %v502_v5 = vpop.permute.xlu1 %501 }
 0x154   :  { %v504_v6 = vpop.permute.xlu0 %503 }
 0x155   :  { %v205_v7 = vpop.permute.xlu1 %204  ;;  %v506_v26 = vsel %vm208_vm2, %v504_v6, %v502_v5  ;;  %v505_v30 = vsel %vm208_vm2, %v502_v5, %v504_v6 }
 0x156   :  { %v210_v28 = vsel %vm208_vm2, %v205_v7, %v203_v4  ;;  %v509_v31 = vmul.f32 %v507_v25, %v506_v26  ;;  %v209_v33 = vsel %vm208_vm2, %v203_v4, %v205_v7  ;;  %v510_v38 = vmul.f32 %v508_v29, %v505_v30 }
 0x157   :  { %v213_v34 = vmul.f32 %v507_v25, %v210_v28  ;;  %v214_v43 = vmul.f32 %v508_v29, %v209_v33 }
 0x158   :  { %v220_v8 = vpop.permute.xlu0 %219  ;;  %v511_v42 = vadd.f32 %v509_v31, %v861_v3 }
 0x159   :  { %v218_v9 = vpop.permute.xlu1 %217  ;;  %v215_v52 = vadd.f32 %v213_v34, %v861_v3  ;;  %v216_v5 = vadd.f32 %v214_v43, %v861_v3 }
 0x15a   :  { %v223_v37 = vsel %vm221_vm3, %v220_v8, %v218_v9  ;;  %v222_v40 = vsel %vm221_vm3, %v218_v9, %v220_v8 }
 0x15b   :  { %v226_v53 = vmul.f32 %v224_v36, %v223_v37  ;;  %v227_v58 = vmul.f32 %v225_v39, %v222_v40  ;;  %v266_v40 = vld [vmem:[%s1027_s5 + $0x58] sm:$0xff] }
 0x15c   :  { %v516_v10 = vpop.permute.xlu0 %515 }
 0x15d   :  { %v514_v11 = vpop.permute.xlu1 %513 }
 0x15e   :  { %v518_v41 = vsel %vm221_vm3, %v516_v10, %v514_v11  ;;  %v517_v44 = vsel %vm221_vm3, %v514_v11, %v516_v10  ;;  %v512_v10 = vadd.f32 %v510_v38, %v861_v3  ;;  %v228_v11 = vadd.f32 %v226_v53, %v215_v52 }
 0x15f   :  { %v521_v59 = vmul.f32 %v518_v41, %v224_v36  ;;  %v522_v63 = vmul.f32 %v517_v44, %v225_v39 }
 0x160   :  { %v233_v12 = vpop.permute.xlu0 %232 }
 0x161   :  { %v231_v13 = vpop.permute.xlu1 %230  ;;  %v523_v25 = vadd.f32 %v521_v59, %v511_v42  ;;  %v524_v26 = vadd.f32 %v522_v63, %v512_v10 }
 0x162   :  { %v236_v50 = vsel %vm234_vm4, %v233_v12, %v231_v13  ;;  %v235_v55 = vsel %vm234_vm4, %v231_v13, %v233_v12 }
 0x163   :  { %v239_v0 = vmul.f32 %v237_v49, %v236_v50  ;;  %v240_v6 = vmul.f32 %v238_v54, %v235_v55 }
 0x164   :  { %v528_v14 = vpop.permute.xlu0 %527 }
 0x165   :  { %v526_v15 = vpop.permute.xlu1 %525  ;;  %v241_v28 = vadd.f32 %v239_v0, %v228_v11 }
 0x166   :  { %v530_v56 = vsel %vm234_vm4, %v528_v14, %v526_v15  ;;  %v529_v60 = vsel %vm234_vm4, %v526_v15, %v528_v14  ;;  %v229_v15 = vadd.f32 %v227_v58, %v216_v5 }
 0x167   :  { %v533_v7 = vmul.f32 %v530_v56, %v237_v49  ;;  %v534_v12 = vmul.f32 %v529_v60, %v238_v54 }
 0x168   :  { %v246_v16 = vpop.permute.xlu0 %245  ;;  %v242_v30 = vadd.f32 %v240_v6, %v229_v15  ;;  %v304_v6 = vld [vmem:[%s1027_s5 + $0x80] sm:$0xff] }
 0x169   :  { %v244_v17 = vpop.permute.xlu1 %243  ;;  %v535_v31 = vadd.f32 %v533_v7, %v523_v25  ;;  %v536_v33 = vadd.f32 %v534_v12, %v524_v26 }
 0x16a   :  { %v249_v62 = vsel %vm247_vm5, %v246_v16, %v244_v17  ;;  %v248_v2 = vsel %vm247_vm5, %v244_v17, %v246_v16 }
 0x16b   :  { %v252_v13 = vmul.f32 %v250_v61, %v249_v62  ;;  %v253_v16 = vmul.f32 %v251_v1, %v248_v2 }
 0x16c   :  { %v540_v19 = vpop.permute.xlu0 %539 }
 0x16d   :  { %v538_v20 = vpop.permute.xlu1 %537  ;;  %v254_v34 = vadd.f32 %v252_v13, %v241_v28  ;;  %v255_v37 = vadd.f32 %v253_v16, %v242_v30 }
 0x16e   :  { %v542_v4 = vsel %vm247_vm5, %v540_v19, %v538_v20  ;;  %v541_v8 = vsel %vm247_vm5, %v538_v20, %v540_v19  ;;  %v265_v19 = vld [vmem:[%s1027_s5 + $0x50] sm:$0xff] }
 0x16f   :  { %v545_v17 = vmul.f32 %v542_v4, %v250_v61  ;;  %v546_v29 = vmul.f32 %v541_v8, %v251_v1  ;;  %v256_v49 = vadd.f32 %v254_v34, %v850_v45 }
 0x170   :  { %v866_v22 = vpop.permute.xlu0 %260 }
 0x171   :  { %v868_v23 = vpop.permute.xlu1 %258  ;;  %v547_v38 = vadd.f32 %v545_v17, %v535_v31  ;;  %v548_v39 = vadd.f32 %v546_v29, %v536_v33 }
 0x172   :  { %v263_v3 = vsel %vm262_vm6, %v868_v23, %v866_v22  ;;  %v264_v41 = vsel %vm262_vm6, %v866_v22, %v868_v23  ;;  %v278_v22 = vld [vmem:[%s1027_s5 + $0x60] sm:$0xff]  ;;  %v279_v23 = vld [vmem:[%s1027_s5 + $0x68] sm:$0xff] }
 0x173   :  { %v267_v42 = vmul.f32 %v265_v19, %v263_v3  ;;  %v549_v58 = vadd.f32 %v547_v38, %v854_v47  ;;  %v550_v59 = vadd.f32 %v548_v39, %v856_v48  ;;  %v292_v47 = vld [vmem:[%s1027_s5 + $0x78] sm:$0xff] }
 0x174   :  { %v871_v24 = vpop.permute.xlu0 %553 }
 0x175   :  { %v876_v27 = vpop.permute.xlu1 %551  ;;  %v269_v56 = vadd.f32 %v267_v42, %v256_v49 }
 0x176   :  { %v555_v43 = vsel %vm262_vm6, %v876_v27, %v871_v24  ;;  %v556_v50 = vsel %vm262_vm6, %v871_v24, %v876_v27  ;;  %v257_v24 = vadd.f32 %v255_v37, %v852_v46  ;;  %v268_v27 = vmul.f32 %v266_v40, %v264_v41  ;;  %v291_v46 = vld [vmem:[%s1027_s5 + $0x70] sm:$0xff] }
 0x177   :  { %v559_v54 = vmul.f32 %v555_v43, %v265_v19  ;;  %v560_v61 = vmul.f32 %v556_v50, %v266_v40 }
 0x178   :  { %v882_v32 = vpop.permute.xlu0 %273  ;;  %v270_v2 = vadd.f32 %v268_v27, %v257_v24 }
 0x179   :  { %v885_v35 = vpop.permute.xlu1 %271  ;;  %v561_v4 = vadd.f32 %v559_v54, %v549_v58  ;;  %v562_v13 = vadd.f32 %v560_v61, %v550_v59 }
 0x17a   :  { %v276_v52 = vsel %vm275_vm7, %v885_v35, %v882_v32  ;;  %v277_v45 = vsel %vm275_vm7, %v882_v32, %v885_v35 }
 0x17b   :  { %v280_v32 = vmul.f32 %v278_v22, %v276_v52  ;;  %v281_v35 = vmul.f32 %v279_v23, %v277_v45 }
 0x17c   :  { %v909_v51 = vpop.permute.xlu0 %565 }
 0x17d   :  { %v564_v57 = vpop.permute.xlu1 %563  ;;  %v282_v16 = vadd.f32 %v280_v32, %v269_v56  ;;  %v283_v17 = vadd.f32 %v281_v35, %v270_v2  ;;  %v341_v56 = vshrl.u32 %v206_v18, 7  ;;  %v705_v32 = vmov 1966171168  }
 0x17e   :  { %v567_v55 = vsel %vm275_vm7, %v564_v57, %v909_v51  ;;  %v568_v60 = vsel %vm275_vm7, %v909_v51, %v564_v57  ;;  %v350_v35 = vunpack.c.l.s4 %v705_v32 }
 0x17f   :  { %v571_v0 = vmul.f32 %v567_v55, %v278_v22  ;;  %v572_v5 = vmul.f32 %v568_v60, %v279_v23 }
 0x180   :  { %v287_v9 = vpop.permute.xlu0 %286 }
 0x181   :  { %v285_v14 = vpop.permute.xlu1 %284  ;;  %v573_v26 = vadd.f32 %v571_v0, %v561_v4  ;;  %v574_v29 = vadd.f32 %v572_v5, %v562_v13  ;;  %v351_v4 = vunpack.c.0.s8 %v350_v35 }
 0x182   :  { %v289_v62 = vsel %vm288_vm8, %v285_v14, %v287_v9  ;;  %v290_v48 = vsel %vm288_vm8, %v287_v9, %v285_v14  ;;  %v305_v9 = vld [vmem:[%s1027_s5 + $0x88] sm:$0xff] }
 0x183   :  { %v293_v8 = vmul.f32 %v291_v46, %v289_v62  ;;  %v294_v14 = vmul.f32 %v292_v47, %v290_v48 }
 0x184   :  { %v578_v20 = vpop.permute.xlu0 %577 }
 0x185   :  { %v576_v36 = vpop.permute.xlu1 %575  ;;  %v295_v3 = vadd.f32 %v293_v8, %v282_v16 }
 0x186   :  { %v579_v51 = vsel %vm288_vm8, %v576_v36, %v578_v20  ;;  %v580_v57 = vsel %vm288_vm8, %v578_v20, %v576_v36  ;;  %v296_v20 = vadd.f32 %v294_v14, %v283_v17  ;;  %v354_v14 = vsub.s32 %v351_v4, %v341_v56 }
 0x187   :  { %v583_v15 = vmul.f32 %v579_v51, %v291_v46  ;;  %v584_v25 = vmul.f32 %v580_v57, %v292_v47  ;;  %v342_v47 = vsub.s32 0, %v341_v56 }
 0x188   :  { %v300_v44 = vpop.permute.xlu0 %299 }
 0x189   :  { %v298_v53 = vpop.permute.xlu1 %297  ;;  %v585_v33 = vadd.f32 %v583_v15, %v573_v26  ;;  %v586_v34 = vadd.f32 %v584_v25, %v574_v29 }
 0x18a   :  { %v302_v7 = vsel %vm301_vm9, %v298_v53, %v300_v44  ;;  %v303_v10 = vsel %vm301_vm9, %v300_v44, %v298_v53 }
 0x18b   :  { %v306_v28 = vmul.f32 %v304_v6, %v302_v7  ;;  %v307_v30 = vmul.f32 %v305_v9, %v303_v10 }
 0x18c   :  { %v590_v63 = vpop.permute.xlu0 %589 }
 0x18d   :  { %v588_v1 = vpop.permute.xlu1 %587  ;;  %v308_v36 = vadd.f32 %v306_v28, %v295_v3  ;;  %v309_v37 = vadd.f32 %v307_v30, %v296_v20 }
 0x18e   :  { %v591_v11 = vsel %vm301_vm9, %v588_v1, %v590_v63  ;;  %v592_v12 = vsel %vm301_vm9, %v590_v63, %v588_v1 }
 0x18f   :  { %v595_v31 = vmul.f32 %v591_v11, %v304_v6  ;;  %v596_v19 = vmul.f32 %v592_v12, %v305_v9  ;;  %v312_v39 = vmul.f32 0.01, %v308_v36  ;;  %v313_v40 = vmul.f32 0.01, %v309_v37 }
 0x190   :  { %vm310_vm10 = vcmp.gt.f32.partialorder %v308_v36, 0.0  ;;  %vm311_vm11 = vcmp.gt.f32.partialorder %v309_v37, 0.0 }
 0x191   :  { %v597_v21 = vadd.f32 %v595_v31, %v585_v33  ;;  %v598_v38 = vadd.f32 %v596_v19, %v586_v34  ;;  %v314_v44 = vsel %vm310_vm10, %v308_v36, %v312_v39  ;;  %v315_v49 = vsel %vm311_vm11, %v309_v37, %v313_v40 }
 0x193   :  { %v601_v41 = vmul.f32 0.01, %v597_v21  ;;  %v602_v42 = vmul.f32 0.01, %v598_v38  ;;  %vm599_vm12 = vcmp.gt.f32.partialorder %v597_v21, 0.0  ;;  %vm600_vm13 = vcmp.gt.f32.partialorder %v598_v38, 0.0 }
 0x195   :  { %v603_v50 = vsel %vm599_vm12, %v597_v21, %v601_v41  ;;  %v604_v22 = vsel %vm600_vm13, %v598_v38, %v602_v42 }
 0x19d   :  { %v338_v2 = vpop.permute.xlu0 %337 }
 0x19e   :  { %v319_v43 = vpop.permute.xlu1 %318  ;;  %v343_v9 = vrot.slane %v338_v2, %v342_v47 }
 0x19f   :  { %v321_v23 = vmul.f32 %v319_v43, %v314_v44  ;;  %v322_v52 = vmul.f32 %v319_v43, %v315_v49  ;;  %v605_v45 = vmul.f32 %v603_v50, %v319_v43  ;;  %v606_v53 = vmul.f32 %v604_v22, %v319_v43 }
 0x1a1   :  { %v323_v24 = vrot.slane %v321_v23, 4  ;;  %v329_v27 = vrot.slane %v322_v52, 4  ;;  %v607_v54 = vrot.slane %v605_v45, 4  ;;  %v613_v55 = vrot.slane %v606_v53, 4 }
 0x1a3   :  { %v324_v58 = vadd.f32 %v323_v24, %v321_v23  ;;  %v330_v59 = vadd.f32 %v329_v27, %v322_v52  ;;  %v608_v60 = vadd.f32 %v607_v54, %v605_v45  ;;  %v614_v61 = vadd.f32 %v613_v55, %v606_v53 }
 0x1a5   :  { %v325_v46 = vrot.slane %v324_v58, 2  ;;  %v331_v62 = vrot.slane %v330_v59, 2  ;;  %v609_v63 = vrot.slane %v608_v60, 2  ;;  %v615_v0 = vrot.slane %v614_v61, 2 }
 0x1a7   :  { %v326_v48 = vadd.f32 %v325_v46, %v324_v58  ;;  %v332_v51 = vadd.f32 %v331_v62, %v330_v59  ;;  %v610_v57 = vadd.f32 %v609_v63, %v608_v60  ;;  %v616_v1 = vadd.f32 %v615_v0, %v614_v61 }
 0x1a9   :  { %v327_v5 = vrot.slane %v326_v48, 1  ;;  %v333_v6 = vrot.slane %v332_v51, 1  ;;  %v611_v7 = vrot.slane %v610_v57, 1  ;;  %v617_v8 = vrot.slane %v616_v1, 1 }
 0x1ab   :  { %v328_v10 = vadd.f32 %v327_v5, %v326_v48  ;;  %v334_v11 = vadd.f32 %v333_v6, %v332_v51  ;;  %v612_v12 = vadd.f32 %v611_v7, %v610_v57  ;;  %v618_v13 = vadd.f32 %v617_v8, %v616_v1 }
 0x1ad   :  { %v344_v15 = vadd.f32 %v343_v9, %v328_v10  ;;  %v345_v25 = vadd.f32 %v343_v9, %v334_v11  ;;  %v619_v16 = vadd.f32 %v612_v12, %v343_v9  ;;  %v620_v17 = vadd.f32 %v618_v13, %v343_v9 }
 0x1af   :  { %v348_v26 = vcombine.low %v344_v15, %v345_v25  ;;  %v623_v28 = vcombine.low %v619_v16, %v620_v17 }
 0x1b1   :  { %v355_v29 = vrot.slane %v348_v26, %v354_v14  ;;  %v630_v30 = vrot.slane %v623_v28, %v354_v14 }
 0x1b3   :  { %v362_v31 = vrot.slane %v355_v29, %v354_v14  ;;  %v637_v19 = vrot.slane %v630_v30, %v354_v14 }
 0x1b5   :  { %368 = vst.msk [vmem:[%s1028_s6] ss:$2 sm:$0x3] %vm366_vm14, %v362_v31  ;;  %673 = vst.msk [vmem:[%s1028_s6 + $0x1] ss:$2 sm:$0x3] %vm366_vm14, %v637_v19 }

</bundles_post_ra>
